<compile_context>
chip_gen: v5e
topology: v5e:2x2
jax: 0.10.0
libtpu: 0.0.40
codegen_flags: <defaults>
</compile_context>

<pallas_src>
import functools

import jax
import jax.numpy as jnp
from jax.experimental import pallas as pl
from jax.experimental.pallas import tpu as pltpu


def _shoot_infs(x):
    """Vectorized torch `shoot_infs`: replace infs by max of (x with infs zeroed)."""
    mask = jnp.isinf(x)
    x0 = jnp.where(mask, 0.0, x)
    return jnp.where(mask, jnp.max(x0), x0)


def _sinkhorn_kernel(logits_ref, out_ref, *, num_iters, inv_eps, r, c):
    f32 = jnp.float32
    bp, kp = out_ref.shape

    # forward(): q = logits / eps; q -= max(q); Q = exp(q)   (kept as [B, K]).
    s = logits_ref[...].astype(f32) * inv_eps          # multiply, not divide
    m = jnp.max(s)                                     # -inf pads never win the max
    p = jnp.exp(s - m)                                 # values in [0, 1]
    # Force -inf-padded entries (and real -inf logits, same as torch) to exact 0
    # without relying on the hardware exp's -inf special-value handling.
    p = jnp.where(s == -jnp.inf, 0.0, p)
    # torch's post-exp shoot_infs is provably the identity here (p <= 1): removed.

    # iterate(): Q /= sum(Q).  P now lives in the output block (working buffer).
    out_ref[...] = p * (1.0 / jnp.sum(p))

    # Scaling-vector Sinkhorn: P stays fixed in VMEM; carry
    #   alpha [1, Kp]  (torch's per-prototype row scalings -> our lane axis)
    #   beta  [Bp, 1]  (torch's per-sample column scalings -> our sublane axis)
    # so the effective Q == P * alpha * beta and each iteration does 2 tile
    # read/reduce passes and 0 tile writes.
    alpha = jnp.ones((1, kp), f32)
    beta = jnp.ones((bp, 1), f32)
    s_row = None

    for _ in range(num_iters):   # num_iters is small (3): keep statically unrolled
        # torch: u = sum(Q, dim=1); u = shoot_infs(r / u); Q *= u.unsqueeze(1)
        # With Q = P * alpha * beta:  u = alpha * sum(P * beta, axis=0).
        u = alpha * jnp.sum(out_ref[...] * beta, axis=0, keepdims=True)
        # r/u is inf only when u == 0, which only happens for an identically-zero
        # column of P (padded or fully-underflowed).  Whatever finite value
        # replaces it only ever multiplies that zero column, so shoot_infs'
        # max-of-finite and 1.0 yield the same output; 1.0 additionally keeps the
        # accumulated alpha of padded columns from ever overflowing.
        alpha = alpha * jnp.where(u > 0.0, r / u, 1.0)

        # torch: Q *= (c / sum(Q, dim=0)).unsqueeze(0).  With the scaling vectors
        # the old beta cancels exactly: beta_new = c / sum(P * alpha, axis=1).
        s_row = jnp.sum(out_ref[...] * alpha, axis=1, keepdims=True)
        beta = jnp.where(s_row > 0.0, c / s_row, 0.0)   # 0 for padded/empty rows

    if s_row is None:            # num_iters == 0 corner case
        s_row = jnp.sum(out_ref[...], axis=1, keepdims=True)

    # (Q / sum(Q, dim=0, keepdim=True)).t(): the final beta cancels exactly and
    # s_row from the last iteration is already the normalizer.  Divide only the
    # small [Bp, 1] vector, then one broadcast-multiply pass over the tile.
    inv_row = jnp.where(s_row > 0.0, 1.0 / s_row, 0.0)
    out_ref[...] = out_ref[...] * alpha * inv_row


def sinkhorn_knopp(logits, num_iters=3, epsilon=0.05):
    """Pallas equivalent of SinkhornKnopp(num_iters, epsilon).forward(logits)."""
    b, k = logits.shape
    bp = ((b + 7) // 8) * 8            # sublane multiple
    kp = ((k + 127) // 128) * 128      # lane-dense: multiple of 128

    x = logits.astype(jnp.float32)
    if (bp, kp) != (b, k):
        # -inf logits -> exact zeros after exp: padded rows/columns carry zero
        # mass, so they never touch the real entries (zero columns get a no-op
        # scaling, zero rows get beta = 0).
        x = jnp.pad(x, ((0, bp - b), (0, kp - k)), constant_values=-jnp.inf)

    kernel = functools.partial(
        _sinkhorn_kernel,
        num_iters=num_iters,
        inv_eps=1.0 / float(epsilon),
        r=1.0 / k,        # torch: ones(Q.shape[0]) / Q.shape[0]  (Q is [K, B])
        c=1.0 / b,        # torch: ones(Q.shape[1]) / Q.shape[1]
    )

    # Whole problem stays resident in VMEM across all Sinkhorn iterations (the
    # point of fusing).  Cap the scoped limit so the same code also fits v7x's
    # 64 MiB VMEM; for B*K beyond that, tile over B with a grid instead.
    tile_bytes = bp * kp * 4
    vmem_limit = int(max(4 << 20, min(48 << 20, 8 * tile_bytes)))

    out = pl.pallas_call(
        kernel,
        out_shape=jax.ShapeDtypeStruct((bp, kp), jnp.float32),
        in_specs=[pl.BlockSpec((bp, kp), lambda: (0, 0))],
        out_specs=pl.BlockSpec((bp, kp), lambda: (0, 0)),
        compiler_params=pltpu.CompilerParams(vmem_limit_bytes=vmem_limit),
    )(x)

    if (bp, kp) != (b, k):
        out = out[:b, :k]
    return out


def _reference(logits, num_iters=3, epsilon=0.05):
    """Pure-JAX mirror of the PyTorch module (for the sanity check)."""
    q = logits.astype(jnp.float32) / epsilon
    q = jnp.exp(q - jnp.max(q)).T                      # torch Q, [K, B]
    q = _shoot_infs(q)
    q = q / jnp.sum(q)
    kk, bb = q.shape
    r = jnp.ones((kk,), jnp.float32) / kk
    c = jnp.ones((bb,), jnp.float32) / bb
    for _ in range(num_iters):
        u = jnp.sum(q, axis=1)
        u = _shoot_infs(r / u)
        q = q * u[:, None]
        q = q * (c / jnp.sum(q, axis=0))[None, :]
    return (q / jnp.sum(q, axis=0, keepdims=True)).T.astype(jnp.float32)


if __name__ == "__main__":
    key = jax.random.PRNGKey(0)
    k0, k1 = jax.random.split(key)

    # Shape matching the module's 2-D logits input (batch x prototypes).
    logits = jax.random.normal(k0, (8, 32), dtype=jnp.float32)
    out = jax.block_until_ready(sinkhorn_knopp(logits))
    ref = _reference(logits)
    assert out.shape == logits.shape and out.dtype == jnp.float32
    assert bool(jnp.all(jnp.isfinite(out)))
    assert jnp.allclose(out, ref, atol=1e-6, rtol=2e-4), float(
        jnp.max(jnp.abs(out - ref)))

    # Second shape exercising both B- and K-padding paths (6x200 -> 8x256 tile).
    logits2 = jax.random.normal(k1, (6, 200), dtype=jnp.float32)
    out2 = jax.block_until_ready(sinkhorn_knopp(logits2))
    ref2 = _reference(logits2)
    assert out2.shape == logits2.shape and out2.dtype == jnp.float32
    assert bool(jnp.all(jnp.isfinite(out2)))
    assert jnp.allclose(out2, ref2, atol=1e-6, rtol=2e-4), float(
        jnp.max(jnp.abs(out2 - ref2)))

    print("KERNEL_OK")
</pallas_src>

<mosaic_0001>
module attributes {stable_mosaic.version = 11 : i64} {
  func.func @_sinkhorn_kernel(%arg0: memref<8x128xf32, #tpu.memory_space<vmem>>, %arg1: memref<8x128xf32, #tpu.memory_space<vmem>>) attributes {dimension_semantics = [], scalar_prefetch = 0 : i64, scratch_operands = 0 : i64, tpu.core_type = #tpu.core_type<tc>} {
    %c0 = arith.constant 0 : index
    %c0_0 = arith.constant 0 : index
    %0 = vector.load %arg0[%c0, %c0_0] : memref<8x128xf32, #tpu.memory_space<vmem>>, vector<8x128xf32>
    %cst = arith.constant 2.000000e+01 : f32
    %1 = vector.broadcast %cst : f32 to vector<8x128xf32>
    %2 = arith.mulf %0, %1 : vector<8x128xf32>
    %3 = vector.shape_cast %2 : vector<8x128xf32> to vector<1x8x128xf32>
    %cst_1 = arith.constant dense<0xFF800000> : vector<1xf32>
    %4 = vector.multi_reduction <maximumf>, %3, %cst_1 [1, 2] : vector<1x8x128xf32> to vector<1xf32>
    %5 = vector.shape_cast %4 : vector<1xf32> to vector<1x1x1xf32>
    %6 = vector.extract %5[0, 0, 0] : f32 from vector<1x1x1xf32>
    %7 = vector.broadcast %6 : f32 to vector<8x128xf32>
    %8 = arith.subf %2, %7 : vector<8x128xf32>
    %9 = math.exp %8 : vector<8x128xf32>
    %cst_2 = arith.constant 0xFF800000 : f32
    %10 = vector.broadcast %cst_2 : f32 to vector<8x128xf32>
    %11 = arith.cmpf oeq, %2, %10 : vector<8x128xf32>
    %cst_3 = arith.constant 0.000000e+00 : f32
    %12 = vector.broadcast %cst_3 : f32 to vector<8x128xf32>
    %13 = arith.select %11, %12, %9 : vector<8x128xi1>, vector<8x128xf32>
    %14 = vector.shape_cast %13 : vector<8x128xf32> to vector<1x8x128xf32>
    %cst_4 = arith.constant dense<0.000000e+00> : vector<1xf32>
    %15 = vector.multi_reduction <add>, %14, %cst_4 [1, 2] : vector<1x8x128xf32> to vector<1xf32>
    %16 = vector.shape_cast %15 : vector<1xf32> to vector<1x1x1xf32>
    %17 = vector.extract %16[0, 0, 0] : f32 from vector<1x1x1xf32>
    %cst_5 = arith.constant 1.000000e+00 : f32
    %18 = arith.divf %cst_5, %17 : f32
    %19 = vector.broadcast %18 : f32 to vector<8x128xf32>
    %20 = arith.mulf %13, %19 : vector<8x128xf32>
    %c0_6 = arith.constant 0 : index
    %c0_7 = arith.constant 0 : index
    %21 = vector.load %arg1[%c0_6, %c0_7] : memref<8x128xf32, #tpu.memory_space<vmem>>, vector<8x128xf32>
    tpu.vector_store %arg1[%c0_6, %c0_7], %20 {strides = array<i32>} : memref<8x128xf32, #tpu.memory_space<vmem>>, vector<8x128xf32>,
    %cst_8 = arith.constant 1.000000e+00 : f32
    %22 = vector.broadcast %cst_8 : f32 to vector<1x128xf32>
    %cst_9 = arith.constant 1.000000e+00 : f32
    %23 = vector.broadcast %cst_9 : f32 to vector<8x1xf32>
    %c0_10 = arith.constant 0 : index
    %c0_11 = arith.constant 0 : index
    %24 = vector.load %arg1[%c0_10, %c0_11] : memref<8x128xf32, #tpu.memory_space<vmem>>, vector<8x128xf32>
    %25 = vector.broadcast %23 : vector<8x1xf32> to vector<8x128xf32>
    %26 = arith.mulf %24, %25 : vector<8x128xf32>
    %cst_12 = arith.constant dense<0.000000e+00> : vector<128xf32>
    %27 = vector.multi_reduction <add>, %26, %cst_12 [0] : vector<8x128xf32> to vector<128xf32>
    %28 = vector.shape_cast %27 : vector<128xf32> to vector<1x128xf32>
    %29 = arith.mulf %22, %28 : vector<1x128xf32>
    %cst_13 = arith.constant 0.000000e+00 : f32
    %30 = vector.broadcast %cst_13 : f32 to vector<1x128xf32>
    %31 = arith.cmpf ogt, %29, %30 : vector<1x128xf32>
    %cst_14 = arith.constant 3.125000e-02 : f32
    %32 = vector.broadcast %cst_14 : f32 to vector<1x128xf32>
    %33 = arith.divf %32, %29 : vector<1x128xf32>
    %cst_15 = arith.constant 1.000000e+00 : f32
    %34 = vector.broadcast %cst_15 : f32 to vector<1x128xf32>
    %35 = arith.select %31, %33, %34 : vector<1x128xi1>, vector<1x128xf32>
    %36 = arith.mulf %22, %35 : vector<1x128xf32>
    %c0_16 = arith.constant 0 : index
    %c0_17 = arith.constant 0 : index
    %37 = vector.load %arg1[%c0_16, %c0_17] : memref<8x128xf32, #tpu.memory_space<vmem>>, vector<8x128xf32>
    %38 = vector.broadcast %36 : vector<1x128xf32> to vector<8x128xf32>
    %39 = arith.mulf %37, %38 : vector<8x128xf32>
    %cst_18 = arith.constant dense<0.000000e+00> : vector<8xf32>
    %40 = vector.multi_reduction <add>, %39, %cst_18 [1] : vector<8x128xf32> to vector<8xf32>
    %41 = vector.shape_cast %40 : vector<8xf32> to vector<8x1xf32>
    %cst_19 = arith.constant 0.000000e+00 : f32
    %42 = vector.broadcast %cst_19 : f32 to vector<8x1xf32>
    %43 = arith.cmpf ogt, %41, %42 : vector<8x1xf32>
    %cst_20 = arith.constant 1.250000e-01 : f32
    %44 = vector.broadcast %cst_20 : f32 to vector<8x1xf32>
    %45 = arith.divf %44, %41 : vector<8x1xf32>
    %cst_21 = arith.constant 0.000000e+00 : f32
    %46 = vector.broadcast %cst_21 : f32 to vector<8x1xf32>
    %47 = arith.select %43, %45, %46 : vector<8x1xi1>, vector<8x1xf32>
    %c0_22 = arith.constant 0 : index
    %c0_23 = arith.constant 0 : index
    %48 = vector.load %arg1[%c0_22, %c0_23] : memref<8x128xf32, #tpu.memory_space<vmem>>, vector<8x128xf32>
    %49 = vector.broadcast %47 : vector<8x1xf32> to vector<8x128xf32>
    %50 = arith.mulf %48, %49 : vector<8x128xf32>
    %cst_24 = arith.constant dense<0.000000e+00> : vector<128xf32>
    %51 = vector.multi_reduction <add>, %50, %cst_24 [0] : vector<8x128xf32> to vector<128xf32>
    %52 = vector.shape_cast %51 : vector<128xf32> to vector<1x128xf32>
    %53 = arith.mulf %36, %52 : vector<1x128xf32>
    %cst_25 = arith.constant 0.000000e+00 : f32
    %54 = vector.broadcast %cst_25 : f32 to vector<1x128xf32>
    %55 = arith.cmpf ogt, %53, %54 : vector<1x128xf32>
    %cst_26 = arith.constant 3.125000e-02 : f32
    %56 = vector.broadcast %cst_26 : f32 to vector<1x128xf32>
    %57 = arith.divf %56, %53 : vector<1x128xf32>
    %cst_27 = arith.constant 1.000000e+00 : f32
    %58 = vector.broadcast %cst_27 : f32 to vector<1x128xf32>
    %59 = arith.select %55, %57, %58 : vector<1x128xi1>, vector<1x128xf32>
    %60 = arith.mulf %36, %59 : vector<1x128xf32>
    %c0_28 = arith.constant 0 : index
    %c0_29 = arith.constant 0 : index
    %61 = vector.load %arg1[%c0_28, %c0_29] : memref<8x128xf32, #tpu.memory_space<vmem>>, vector<8x128xf32>
    %62 = vector.broadcast %60 : vector<1x128xf32> to vector<8x128xf32>
    %63 = arith.mulf %61, %62 : vector<8x128xf32>
    %cst_30 = arith.constant dense<0.000000e+00> : vector<8xf32>
    %64 = vector.multi_reduction <add>, %63, %cst_30 [1] : vector<8x128xf32> to vector<8xf32>
    %65 = vector.shape_cast %64 : vector<8xf32> to vector<8x1xf32>
    %cst_31 = arith.constant 0.000000e+00 : f32
    %66 = vector.broadcast %cst_31 : f32 to vector<8x1xf32>
    %67 = arith.cmpf ogt, %65, %66 : vector<8x1xf32>
    %cst_32 = arith.constant 1.250000e-01 : f32
    %68 = vector.broadcast %cst_32 : f32 to vector<8x1xf32>
    %69 = arith.divf %68, %65 : vector<8x1xf32>
    %cst_33 = arith.constant 0.000000e+00 : f32
    %70 = vector.broadcast %cst_33 : f32 to vector<8x1xf32>
    %71 = arith.select %67, %69, %70 : vector<8x1xi1>, vector<8x1xf32>
    %c0_34 = arith.constant 0 : index
    %c0_35 = arith.constant 0 : index
    %72 = vector.load %arg1[%c0_34, %c0_35] : memref<8x128xf32, #tpu.memory_space<vmem>>, vector<8x128xf32>
    %73 = vector.broadcast %71 : vector<8x1xf32> to vector<8x128xf32>
    %74 = arith.mulf %72, %73 : vector<8x128xf32>
    %cst_36 = arith.constant dense<0.000000e+00> : vector<128xf32>
    %75 = vector.multi_reduction <add>, %74, %cst_36 [0] : vector<8x128xf32> to vector<128xf32>
    %76 = vector.shape_cast %75 : vector<128xf32> to vector<1x128xf32>
    %77 = arith.mulf %60, %76 : vector<1x128xf32>
    %cst_37 = arith.constant 0.000000e+00 : f32
    %78 = vector.broadcast %cst_37 : f32 to vector<1x128xf32>
    %79 = arith.cmpf ogt, %77, %78 : vector<1x128xf32>
    %cst_38 = arith.constant 3.125000e-02 : f32
    %80 = vector.broadcast %cst_38 : f32 to vector<1x128xf32>
    %81 = arith.divf %80, %77 : vector<1x128xf32>
    %cst_39 = arith.constant 1.000000e+00 : f32
    %82 = vector.broadcast %cst_39 : f32 to vector<1x128xf32>
    %83 = arith.select %79, %81, %82 : vector<1x128xi1>, vector<1x128xf32>
    %84 = arith.mulf %60, %83 : vector<1x128xf32>
    %c0_40 = arith.constant 0 : index
    %c0_41 = arith.constant 0 : index
    %85 = vector.load %arg1[%c0_40, %c0_41] : memref<8x128xf32, #tpu.memory_space<vmem>>, vector<8x128xf32>
    %86 = vector.broadcast %84 : vector<1x128xf32> to vector<8x128xf32>
    %87 = arith.mulf %85, %86 : vector<8x128xf32>
    %cst_42 = arith.constant dense<0.000000e+00> : vector<8xf32>
    %88 = vector.multi_reduction <add>, %87, %cst_42 [1] : vector<8x128xf32> to vector<8xf32>
    %89 = vector.shape_cast %88 : vector<8xf32> to vector<8x1xf32>
    %cst_43 = arith.constant 0.000000e+00 : f32
    %90 = vector.broadcast %cst_43 : f32 to vector<8x1xf32>
    %91 = arith.cmpf ogt, %89, %90 : vector<8x1xf32>
    %cst_44 = arith.constant 1.000000e+00 : f32
    %92 = vector.broadcast %cst_44 : f32 to vector<8x1xf32>
    %93 = arith.divf %92, %89 : vector<8x1xf32>
    %cst_45 = arith.constant 0.000000e+00 : f32
    %94 = vector.broadcast %cst_45 : f32 to vector<8x1xf32>
    %95 = arith.select %91, %93, %94 : vector<8x1xi1>, vector<8x1xf32>
    %c0_46 = arith.constant 0 : index
    %c0_47 = arith.constant 0 : index
    %96 = vector.load %arg1[%c0_46, %c0_47] : memref<8x128xf32, #tpu.memory_space<vmem>>, vector<8x128xf32>
    %97 = vector.broadcast %84 : vector<1x128xf32> to vector<8x128xf32>
    %98 = arith.mulf %96, %97 : vector<8x128xf32>
    %99 = vector.broadcast %95 : vector<8x1xf32> to vector<8x128xf32>
    %100 = arith.mulf %98, %99 : vector<8x128xf32>
    %c0_48 = arith.constant 0 : index
    %c0_49 = arith.constant 0 : index
    %101 = vector.load %arg1[%c0_48, %c0_49] : memref<8x128xf32, #tpu.memory_space<vmem>>, vector<8x128xf32>
    tpu.vector_store %arg1[%c0_48, %c0_49], %100 {strides = array<i32>} : memref<8x128xf32, #tpu.memory_space<vmem>>, vector<8x128xf32>,
    return
  }
}

</mosaic_0001>

<bundles_post_ra>
// kernel: tpu_custom_call.1
= control target key start
LH: loop header
LB: loop body
LE: loop exit
PB: predicated region body
PF: predicated region fallthrough
CT: control target
= control target key end

     0   :  { %6 = vsyncpa [#allocation3], 0  ;;  %s326_s0 = inlined_call_operand.hbm [shape: f32[8,128], index: 0, kind: input, shape index: {}]   ;;  %s327_s1 = inlined_call_operand.hbm [shape: f32[8,128], index: 1, kind: output, shape index: {}]  }
   0x1   :  { %7 = vsyncpa [#allocation4], 0  ;;  %s13_s8 = sshll.u32 %s326_s0, 4  ;;  %s299_s9 = smov [#allocation2]   ;;  %s14_s8 = int_to_ptr.hbm [resolvable:$true] %s13_s8 }
   0x2   :  { %s15_s10 = sshll.u32 %s299_s9, 4  ;;  %s16_s10 = int_to_ptr.vmem [resolvable:$true] %s15_s10 }
   0x3   :  { %18 = dma.hbm_to_vmem [thread:$0]  %s14_s8, 128, %s16_s10, [#allocation3]  }
   0x4   :  { %295 = dma.done.wait [#allocation3], 128  }
   0x5   :  { %296 = vsyncadd [#allocation3], 4294967168  ;;  %v23_v0 = vld [vmem:[#allocation2] sm:$0xff]  ;;  %s300_s13 = smov [#allocation5]   ;;  %s213_s17 = sshll.u32 %s327_s1, 4  ;;  %s214_s17 = int_to_ptr.hbm [resolvable:$true] %s213_s17 }
   0x6   :  { %v24_v1 = vmul.f32 20.0, %v23_v0  ;;  %s211_s14 = sshll.u32 %s300_s13, 4  ;;  %s212_s14 = int_to_ptr.vmem [resolvable:$true] %s211_s14 }
   0x8   :  { %25 = vmax.xlane.f32.xlu0 %v24_v1  ;;  %vm38_vm0 = vcmp.eq.f32.partialorder %v24_v1, -inf }
  0x7b   :  { %v26_v2 = vpop.xlane.xlu0 %25 }
  0x7c   :  { %v27_v3 = vrot.slane %v26_v2, 4 }
  0x7e   :  { %v28_v4 = vmax.f32 %v26_v2, %v27_v3 }
  0x80   :  { %v29_v5 = vrot.slane %v28_v4, 2 }
  0x82   :  { %v30_v6 = vmax.f32 %v28_v4, %v29_v5 }
  0x84   :  { %v31_v7 = vrot.slane %v30_v6, 1 }
  0x86   :  { %v32_v8 = vmax.f32 %v30_v6, %v31_v7 }
  0x88   :  { %223 = vpush %v32_v8 }
  0xb9   :  { %s224_s11 = spop %223 }
  0xba   :  { %v34_v9 = vstv %s224_s11 }
  0xbb   :  { %v35_v10 = vsub.f32 %v24_v1, %v34_v9 }
  0xbd   :  { %v36_v11 = vmul.f32 1.442695, %v35_v10 }
  0xbf   :  { %231 = vpow2.f32 %v36_v11 }
  0xc5   :  { %v232_v12 = vpop.eup %231 }
  0xc6   :  { %v39_v13 = vsel %vm38_vm0, 0.0, %v232_v12 }
  0xc7   :  { %40 = vadd.xlane.f32.xlu0 %v39_v13 }
 0x13a   :  { %v41_v14 = vpop.xlane.xlu0 %40 }
 0x13b   :  { %v42_v15 = vrot.slane %v41_v14, 4 }
 0x13d   :  { %v43_v16 = vadd.f32 %v42_v15, %v41_v14 }
 0x13f   :  { %v44_v17 = vrot.slane %v43_v16, 2 }
 0x141   :  { %v45_v18 = vadd.f32 %v44_v17, %v43_v16 }
 0x143   :  { %v46_v19 = vrot.slane %v45_v18, 1 }
 0x145   :  { %v47_v20 = vadd.f32 %v46_v19, %v45_v18 }
 0x147   :  { %225 = vpush %v47_v20 }
 0x178   :  { %s226_s0 = spop %225 }
 0x179   :  { %v49_v21 = vstv %s226_s0 }
 0x17a   :  { %233 = vrcp.f32 %v49_v21  ;;  %v61_v25 = vand.u32 2147483648, %v49_v21  ;;  %v59_v27 = vand.u32 2147483647, %v49_v21  ;;  %vm55_vm2 = vweird.f32 %v49_v21 }
 0x17c   :  { %v62_v29 = vor.u32 1.1754944e-38, %v61_v25  ;;  %vm60_vm4 = vcmp.eq.f32.partialorder %v59_v27, 8.507059e+37 }
 0x180   :  { %v234_v22 = vpop.eup %233 }
 0x181   :  { %v51_v23 = vmul.f32 %v234_v22, %v49_v21  ;;  %vm56_vm1 = vweird.f32 %v234_v22 }
 0x182   :  { %vm57_vm3 = vmor %vm55_vm2, %vm56_vm1 }
 0x183   :  { %v52_v24 = vsub.f32 1.0, %v51_v23 }
 0x185   :  { %v53_v26 = vmul.f32 %v234_v22, %v52_v24 }
 0x187   :  { %v54_v28 = vadd.f32 %v234_v22, %v53_v26 }
 0x189   :  { %v58_v30 = vsel %vm57_vm3, %v234_v22, %v54_v28 }
 0x18a   :  { %v63_v31 = vsel %vm60_vm4, %v62_v29, %v58_v30 }
 0x18b   :  { %227 = vpush %v63_v31 }
 0x1bc   :  { %s228_s12 = spop %227 }
 0x1bd   :  { %v65_v32 = vstv %s228_s12 }
 0x1be   :  { %v314_v33 = vmul.f32 %v65_v32, %v39_v13 }
 0x1c0   :  { %v69_v34 = vrot.slane %v314_v33, 4 }
 0x1c2   :  { %v70_v35 = vadd.f32 %v69_v34, %v314_v33 }
 0x1c4   :  { %v71_v36 = vrot.slane %v70_v35, 2 }
 0x1c6   :  { %v72_v37 = vadd.f32 %v71_v36, %v70_v35 }
 0x1c8   :  { %v73_v38 = vrot.slane %v72_v37, 1 }
 0x1ca   :  { %v74_v39 = vadd.f32 %v73_v38, %v72_v37 }
 0x1cc   :  { %235 = vrcp.f32 %v74_v39  ;;  %v87_v43 = vand.u32 2147483648, %v74_v39  ;;  %v85_v45 = vand.u32 2147483647, %v74_v39  ;;  %vm81_vm6 = vweird.f32 %v74_v39 }
 0x1cd   :  { %vm75_vm9 = vcmp.gt.f32.partialorder %v74_v39, 0.0 }
 0x1ce   :  { %v88_v47 = vor.u32 1.1754944e-38, %v87_v43  ;;  %vm86_vm8 = vcmp.eq.f32.partialorder %v85_v45, 8.507059e+37 }
 0x1d2   :  { %v236_v40 = vpop.eup %235 }
 0x1d3   :  { %v77_v41 = vmul.f32 %v236_v40, %v74_v39  ;;  %vm82_vm5 = vweird.f32 %v236_v40 }
 0x1d4   :  { %vm83_vm7 = vmor %vm81_vm6, %vm82_vm5 }
 0x1d5   :  { %v78_v42 = vsub.f32 1.0, %v77_v41 }
 0x1d7   :  { %v79_v44 = vmul.f32 %v236_v40, %v78_v42 }
 0x1d9   :  { %v80_v46 = vadd.f32 %v236_v40, %v79_v44 }
 0x1db   :  { %v84_v48 = vsel %vm83_vm7, %v236_v40, %v80_v46 }
 0x1dc   :  { %v89_v49 = vsel %vm86_vm8, %v88_v47, %v84_v48 }
 0x1dd   :  { %v90_v50 = vmul.f32 0.03125, %v89_v49 }
 0x1df   :  { %v91_v51 = vsel %vm75_vm9, %v90_v50, 1.0 }
 0x1e0   :  { %v92_v52 = vmul.f32 %v91_v51, %v314_v33 }
 0x1e2   :  { %93 = vadd.xlane.f32.xlu1 %v92_v52 }
 0x255   :  { %v94_v53 = vpop.xlane.xlu1 %93 }
 0x256   :  { %237 = vrcp.f32 %v94_v53  ;;  %v107_v57 = vand.u32 2147483648, %v94_v53  ;;  %v105_v59 = vand.u32 2147483647, %v94_v53  ;;  %vm101_vm11 = vweird.f32 %v94_v53 }
 0x257   :  { %vm95_vm14 = vcmp.gt.f32.partialorder %v94_v53, 0.0 }
 0x258   :  { %v108_v61 = vor.u32 1.1754944e-38, %v107_v57  ;;  %vm106_vm13 = vcmp.eq.f32.partialorder %v105_v59, 8.507059e+37 }
 0x25c   :  { %v238_v54 = vpop.eup %237 }
 0x25d   :  { %v97_v55 = vmul.f32 %v238_v54, %v94_v53  ;;  %vm102_vm10 = vweird.f32 %v238_v54 }
 0x25e   :  { %vm103_vm12 = vmor %vm101_vm11, %vm102_vm10 }
 0x25f   :  { %v98_v56 = vsub.f32 1.0, %v97_v55 }
 0x261   :  { %v99_v58 = vmul.f32 %v238_v54, %v98_v56 }
 0x263   :  { %v100_v60 = vadd.f32 %v238_v54, %v99_v58 }
 0x265   :  { %v104_v62 = vsel %vm103_vm12, %v238_v54, %v100_v60 }
 0x266   :  { %v109_v63 = vsel %vm106_vm13, %v108_v61, %v104_v62 }
 0x267   :  { %v110_v0 = vmul.f32 0.125, %v109_v63 }
 0x269   :  { %v111_v1 = vsel %vm95_vm14, %v110_v0, 0.0 }
 0x26a   :  { %v112_v2 = vmul.f32 %v111_v1, %v314_v33 }
 0x26c   :  { %v113_v3 = vrot.slane %v112_v2, 4 }
 0x26e   :  { %v114_v4 = vadd.f32 %v113_v3, %v112_v2 }
 0x270   :  { %v115_v5 = vrot.slane %v114_v4, 2 }
 0x272   :  { %v116_v6 = vadd.f32 %v115_v5, %v114_v4 }
 0x274   :  { %v117_v7 = vrot.slane %v116_v6, 1 }
 0x276   :  { %v118_v8 = vadd.f32 %v117_v7, %v116_v6 }
 0x278   :  { %v119_v9 = vmul.f32 %v118_v8, %v91_v51 }
 0x27a   :  { %239 = vrcp.f32 %v119_v9  ;;  %v132_v13 = vand.u32 2147483648, %v119_v9  ;;  %v130_v15 = vand.u32 2147483647, %v119_v9  ;;  %vm126_vm0 = vweird.f32 %v119_v9 }
 0x27b   :  { %vm120_vm3 = vcmp.gt.f32.partialorder %v119_v9, 0.0 }
 0x27c   :  { %v133_v17 = vor.u32 1.1754944e-38, %v132_v13  ;;  %vm131_vm2 = vcmp.eq.f32.partialorder %v130_v15, 8.507059e+37 }
 0x280   :  { %v240_v10 = vpop.eup %239 }
 0x281   :  { %v122_v11 = vmul.f32 %v240_v10, %v119_v9  ;;  %vm127_vm15 = vweird.f32 %v240_v10 }
 0x282   :  { %vm128_vm1 = vmor %vm126_vm0, %vm127_vm15 }
 0x283   :  { %v123_v12 = vsub.f32 1.0, %v122_v11 }
 0x285   :  { %v124_v14 = vmul.f32 %v240_v10, %v123_v12 }
 0x287   :  { %v125_v16 = vadd.f32 %v240_v10, %v124_v14 }
 0x289   :  { %v129_v18 = vsel %vm128_vm1, %v240_v10, %v125_v16 }
 0x28a   :  { %v134_v19 = vsel %vm131_vm2, %v133_v17, %v129_v18 }
 0x28b   :  { %v135_v20 = vmul.f32 0.03125, %v134_v19 }
 0x28d   :  { %v136_v21 = vsel %vm120_vm3, %v135_v20, 1.0 }
 0x28e   :  { %v137_v22 = vmul.f32 %v136_v21, %v91_v51 }
 0x290   :  { %v138_v23 = vmul.f32 %v137_v22, %v314_v33 }
 0x292   :  { %139 = vadd.xlane.f32.xlu1 %v138_v23 }
 0x305   :  { %v140_v24 = vpop.xlane.xlu1 %139 }
 0x306   :  { %241 = vrcp.f32 %v140_v24  ;;  %v153_v28 = vand.u32 2147483648, %v140_v24  ;;  %v151_v30 = vand.u32 2147483647, %v140_v24  ;;  %vm147_vm5 = vweird.f32 %v140_v24 }
 0x307   :  { %vm141_vm8 = vcmp.gt.f32.partialorder %v140_v24, 0.0 }
 0x308   :  { %v154_v32 = vor.u32 1.1754944e-38, %v153_v28  ;;  %vm152_vm7 = vcmp.eq.f32.partialorder %v151_v30, 8.507059e+37 }
 0x30c   :  { %v242_v25 = vpop.eup %241 }
 0x30d   :  { %v143_v26 = vmul.f32 %v242_v25, %v140_v24  ;;  %vm148_vm4 = vweird.f32 %v242_v25 }
 0x30e   :  { %vm149_vm6 = vmor %vm147_vm5, %vm148_vm4 }
 0x30f   :  { %v144_v27 = vsub.f32 1.0, %v143_v26 }
 0x311   :  { %v145_v29 = vmul.f32 %v242_v25, %v144_v27 }
 0x313   :  { %v146_v31 = vadd.f32 %v242_v25, %v145_v29 }
 0x315   :  { %v150_v34 = vsel %vm149_vm6, %v242_v25, %v146_v31 }
 0x316   :  { %v155_v35 = vsel %vm152_vm7, %v154_v32, %v150_v34 }
 0x317   :  { %v156_v36 = vmul.f32 0.125, %v155_v35 }
 0x319   :  { %v157_v37 = vsel %vm141_vm8, %v156_v36, 0.0 }
 0x31a   :  { %v158_v38 = vmul.f32 %v157_v37, %v314_v33 }
 0x31c   :  { %v159_v39 = vrot.slane %v158_v38, 4 }
 0x31e   :  { %v160_v40 = vadd.f32 %v159_v39, %v158_v38 }
 0x320   :  { %v161_v41 = vrot.slane %v160_v40, 2 }
 0x322   :  { %v162_v42 = vadd.f32 %v161_v41, %v160_v40 }
 0x324   :  { %v163_v43 = vrot.slane %v162_v42, 1 }
 0x326   :  { %v164_v44 = vadd.f32 %v163_v43, %v162_v42 }
 0x328   :  { %v165_v45 = vmul.f32 %v164_v44, %v137_v22 }
 0x32a   :  { %243 = vrcp.f32 %v165_v45  ;;  %v178_v49 = vand.u32 2147483648, %v165_v45  ;;  %v176_v51 = vand.u32 2147483647, %v165_v45  ;;  %vm172_vm10 = vweird.f32 %v165_v45 }
 0x32b   :  { %vm166_vm13 = vcmp.gt.f32.partialorder %v165_v45, 0.0 }
 0x32c   :  { %v179_v53 = vor.u32 1.1754944e-38, %v178_v49  ;;  %vm177_vm12 = vcmp.eq.f32.partialorder %v176_v51, 8.507059e+37 }
 0x330   :  { %v244_v46 = vpop.eup %243 }
 0x331   :  { %v168_v47 = vmul.f32 %v244_v46, %v165_v45  ;;  %vm173_vm9 = vweird.f32 %v244_v46 }
 0x332   :  { %vm174_vm11 = vmor %vm172_vm10, %vm173_vm9 }
 0x333   :  { %v169_v48 = vsub.f32 1.0, %v168_v47 }
 0x335   :  { %v170_v50 = vmul.f32 %v244_v46, %v169_v48 }
 0x337   :  { %v171_v52 = vadd.f32 %v244_v46, %v170_v50 }
 0x339   :  { %v175_v54 = vsel %vm174_vm11, %v244_v46, %v171_v52 }
 0x33a   :  { %v180_v55 = vsel %vm177_vm12, %v179_v53, %v175_v54 }
 0x33b   :  { %v181_v56 = vmul.f32 0.03125, %v180_v55 }
 0x33d   :  { %v182_v57 = vsel %vm166_vm13, %v181_v56, 1.0 }
 0x33e   :  { %v183_v58 = vmul.f32 %v182_v57, %v137_v22 }
 0x340   :  { %v184_v59 = vmul.f32 %v183_v58, %v314_v33 }
 0x342   :  { %185 = vadd.xlane.f32.xlu2 %v184_v59 }
 0x3b5   :  { %v186_v60 = vpop.xlane.xlu2 %185 }
 0x3b6   :  { %245 = vrcp.f32 %v186_v60  ;;  %v199_v0 = vand.u32 2147483648, %v186_v60  ;;  %v197_v2 = vand.u32 2147483647, %v186_v60  ;;  %vm193_vm15 = vweird.f32 %v186_v60 }
 0x3b7   :  { %vm187_vm2 = vcmp.gt.f32.partialorder %v186_v60, 0.0 }
 0x3b8   :  { %v200_v4 = vor.u32 1.1754944e-38, %v199_v0  ;;  %vm198_vm1 = vcmp.eq.f32.partialorder %v197_v2, 8.507059e+37 }
 0x3bc   :  { %v246_v61 = vpop.eup %245 }
 0x3bd   :  { %v189_v62 = vmul.f32 %v246_v61, %v186_v60  ;;  %vm194_vm14 = vweird.f32 %v246_v61 }
 0x3be   :  { %vm195_vm0 = vmor %vm193_vm15, %vm194_vm14 }
 0x3bf   :  { %v190_v63 = vsub.f32 1.0, %v189_v62 }
 0x3c1   :  { %v191_v1 = vmul.f32 %v246_v61, %v190_v63 }
 0x3c3   :  { %v192_v3 = vadd.f32 %v246_v61, %v191_v1 }
 0x3c5   :  { %v196_v5 = vsel %vm195_vm0, %v246_v61, %v192_v3 }
 0x3c6   :  { %v201_v33 = vsel %vm198_vm1, %v200_v4, %v196_v5 }
 0x3c7   :  { %v203_v6 = vsel %vm187_vm2, %v201_v33, 0.0 }
 0x3c8   :  { %v204_v7 = vmul.f32 %v203_v6, %v184_v59 }
 0x3ca   :  { %205 = vst [vmem:[#allocation5] sm:$0xff] %v204_v7 }
 0x3cb   :  { %216 = dma.vmem_to_hbm [thread:$0]  %s212_s14, 128, %s214_s17, [#allocation4]  }
 0x3cc   :  { %297 = dma.done.wait [#allocation4], 128  }
 0x3cd   :  { %298 = vsyncadd [#allocation4], 4294967168 }
 0x3ce   :  { %221 = vsyncpa [#allocation3], 1 }
 0x3cf   :  { %222 = vsyncpa [#allocation4], 1 }

</bundles_post_ra>
